<compile_context>
chip_gen: v7x
topology: tpu7x:2x2x1
jax: 0.10.0
libtpu: 0.0.40
codegen_flags: <defaults>
</compile_context>

<pallas_src>
import functools

import jax
import jax.numpy as jnp
from jax.experimental import pallas as pl
from jax.experimental.pallas import tpu as pltpu

_F32 = jnp.float32
_VMEM_BUDGET = 44 * 2**20      # keep comfortably inside v7x's 64 MiB physical VMEM
_VMEM_LIMIT_CAP = 56 * 2**20


def _round_up(x, m):
    return (x + m - 1) // m * m


def _sublane(dtype):
    # sublane multiple for a dtype: 8 (f32), 16 (bf16), 32 (int8 / fp8)
    return 8 * (4 // jnp.dtype(dtype).itemsize)


def _fold_bn(weight_oihw, gamma, beta, running_mean, running_var, bn_eps, conv_bias):
    """Fold BatchNorm (eval / running stats) into a (Cout, K) GEMM weight + bias."""
    Cout, Cin, KH, KW = weight_oihw.shape
    K = KH * KW * Cin
    scale = gamma.astype(_F32) / jnp.sqrt(running_var.astype(_F32) + bn_eps)
    # (kh, kw, ci) ordering along K — must match the in-kernel patch panel.
    wm = jnp.transpose(weight_oihw.astype(_F32), (0, 2, 3, 1)).reshape(Cout, K)
    wm = wm * scale[:, None]
    bias = beta.astype(_F32) - running_mean.astype(_F32) * scale
    if conv_bias is not None:
        bias = bias + conv_bias.astype(_F32) * scale
    return wm, bias.reshape(Cout, 1)


def _shift_panel_kernel(x_ref, w_ref, b_ref, o_ref, *,
                        kh, kw, dilation, wp, lanes, k, k_pad):
    # x_ref: (Cin, L)        flattened padded image, L = Hp*Wp + dilation*(KW-1)
    # w_ref: (Cout_t, K_pad) BN-folded weights, zero-padded along K
    # b_ref: (Cout_t, 1)     BN-folded bias (f32)
    # o_ref: (Cout_t, lanes) lane-dense output panel, lanes = Ho*Wp
    taps = []
    for ih in range(kh):
        for iw in range(kw):
            off = (ih * wp + iw) * dilation            # static per-tap lane shift
            taps.append(x_ref[:, off:off + lanes])     # contiguous lane slice
    if k_pad > k:
        taps.append(jnp.zeros((k_pad - k, lanes), dtype=taps[0].dtype))
    panel = jnp.concatenate(taps, axis=0)              # (K_pad, lanes) im2col panel
    acc = jnp.dot(w_ref[...], panel, preferred_element_type=jnp.float32)
    o_ref[...] = jnp.maximum(acc + b_ref[...], 0.0).astype(o_ref.dtype)


def _im2col_gemm_kernel(p_ref, w_ref, b_ref, o_ref):
    # Fallback path: p_ref (K, thw) pre-built patches, w_ref (Cout, K).
    acc = jnp.dot(w_ref[...], p_ref[...], preferred_element_type=jnp.float32)
    o_ref[...] = jnp.maximum(acc + b_ref[...], 0.0).astype(o_ref.dtype)


def conv_bn_relu(x_nchw, weight_oihw, gamma, beta, running_mean, running_var, *,
                 stride=1, pad=1, dilation=1, bn_eps=1e-5, conv_bias=None,
                 compute_dtype=jnp.bfloat16):
    """Conv2d (groups=1) + BatchNorm2d (eval mode) + ReLU.  NCHW in, NCHW out.

    compute_dtype is the MXU input dtype (bf16 is a native MXU input on
    v5e/v6e/v7x and halves streamed DMA bytes); accumulation is always f32.
    Pass jnp.float32 (or None) for a full-precision path.
    """
    N, Cin, H, W = x_nchw.shape
    Cout, Cin_w, KH, KW = weight_oihw.shape
    assert Cin == Cin_w, "groups != 1 not supported"  # TODO(synk): grouped conv

    if compute_dtype is None:
        compute_dtype = jnp.float32
    out_dtype = x_nchw.dtype
    isz = jnp.dtype(compute_dtype).itemsize
    osz = jnp.dtype(out_dtype).itemsize

    H_out = (H + 2 * pad - dilation * (KH - 1) - 1) // stride + 1
    W_out = (W + 2 * pad - dilation * (KW - 1) - 1) // stride + 1
    Hp, Wp = H + 2 * pad, W + 2 * pad
    K = KH * KW * Cin
    K_pad = _round_up(K, _sublane(compute_dtype))

    wm, bias = _fold_bn(weight_oihw, gamma, beta, running_mean, running_var,
                        bn_eps, conv_bias)
    # Cast BEFORE any data expansion (halves streamed bytes on the bf16 path).
    x_c = x_nchw.astype(compute_dtype)

    # ---------------- path A: in-kernel im2col (stride == 1) ----------------
    if stride == 1:
        lanes = H_out * Wp                      # per-image output panel width
        L = Hp * Wp + dilation * (KW - 1)       # flat image + tail halo
        # Split Cout across a 'parallel' axis when N == 1 so both v7x
        # TensorCores get work (split must stay sublane-aligned).
        n_ct = 2 if (N == 1 and Cout % 16 == 0) else 1
        cout_t = Cout // n_ct
        est = (2 * Cin * L * isz               # whole padded image (double buffered)
               + 2 * cout_t * K_pad * isz      # folded weights
               + 2 * cout_t * 128 * 4          # bias (lane padded)
               + 2 * cout_t * lanes * osz      # output panel block
               + 3 * K_pad * lanes * isz       # in-kernel patch panel + temps
               + cout_t * lanes * 4)           # f32 accumulator
        if est <= _VMEM_BUDGET:
            xp = jnp.pad(x_c, ((0, 0), (0, 0), (pad, pad), (pad, pad)))
            x_flat = jnp.pad(xp.reshape(N, Cin, Hp * Wp),
                             ((0, 0), (0, 0), (0, L - Hp * Wp)))
            wmk = jnp.pad(wm, ((0, 0), (0, K_pad - K))).astype(compute_dtype)

            kernel = functools.partial(
                _shift_panel_kernel, kh=KH, kw=KW, dilation=dilation,
                wp=Wp, lanes=lanes, k=K, k_pad=K_pad)
            out_full = pl.pallas_call(
                kernel,
                out_shape=jax.ShapeDtypeStruct((N, Cout, lanes), out_dtype),
                grid_spec=pltpu.PrefetchScalarGridSpec(
                    num_scalar_prefetch=0,
                    grid=(N, n_ct),
                    in_specs=[
                        # Whole flat padded image; block index constant over the
                        # Cout-tile axis -> fetched once per image.
                        pl.BlockSpec((pl.Squeezed(), Cin, L),
                                     lambda n, j: (n, 0, 0)),
                        pl.BlockSpec((cout_t, K_pad), lambda n, j: (j, 0)),
                        pl.BlockSpec((cout_t, 1), lambda n, j: (j, 0)),
                    ],
                    out_specs=pl.BlockSpec((pl.Squeezed(), cout_t, lanes),
                                           lambda n, j: (n, j, 0)),
                ),
                compiler_params=pltpu.CompilerParams(
                    dimension_semantics=("parallel", "parallel"),
                    vmem_limit_bytes=int(min(_VMEM_LIMIT_CAP,
                                             max(32 * 2**20, 1.5 * est)))),
            )(x_flat, wmk, bias)
            # (N, Cout, Ho*Wp) -> (N, Cout, Ho, Wp); drop the Wp-Wo pad columns.
            return out_full.reshape(N, Cout, H_out, Wp)[:, :, :, :W_out]
    # TODO(synk): strided / very-large layers should get a row-tiled halo-DMA
    # in-kernel path with an 'arbitrary' K-reduction axis + f32 VMEM accumulator
    # and Cout tiling, instead of the wrapper im2col fallback below.

    # -------- path B (fallback): wrapper im2col, lane-dense HW tiles --------
    HW = H_out * W_out
    x_pad = jnp.pad(x_c, ((0, 0), (0, 0), (pad, pad), (pad, pad)))
    cols = []
    for ih in range(KH):
        for iw in range(KW):
            h0, w0 = ih * dilation, iw * dilation
            sl = x_pad[:, :,
                       h0:h0 + (H_out - 1) * stride + 1:stride,
                       w0:w0 + (W_out - 1) * stride + 1:stride]
            cols.append(sl.reshape(N, Cin, HW))
    patches = jnp.concatenate(cols, axis=1)                  # (N, K, HW)
    wmk = wm.astype(compute_dtype)

    def _est_b(t):
        return (2 * K * t * isz + 2 * Cout * K * isz + 2 * Cout * 128 * 4
                + 2 * Cout * t * osz + Cout * t * 4)

    thw = HW
    if HW % 128 == 0:
        cand = [t for t in range(128, HW + 1, 128)
                if HW % t == 0 and _est_b(t) <= _VMEM_BUDGET]
        if cand:
            thw = max(cand)

    out_flat = pl.pallas_call(
        _im2col_gemm_kernel,
        out_shape=jax.ShapeDtypeStruct((N, Cout, HW), out_dtype),
        grid_spec=pltpu.PrefetchScalarGridSpec(
            num_scalar_prefetch=0,
            grid=(N, HW // thw),
            in_specs=[
                pl.BlockSpec((pl.Squeezed(), K, thw), lambda n, j: (n, 0, j)),
                pl.BlockSpec((Cout, K), lambda n, j: (0, 0)),
                pl.BlockSpec((Cout, 1), lambda n, j: (0, 0)),
            ],
            out_specs=pl.BlockSpec((pl.Squeezed(), Cout, thw),
                                   lambda n, j: (n, 0, j)),
        ),
        compiler_params=pltpu.CompilerParams(
            dimension_semantics=("parallel", "parallel"),
            vmem_limit_bytes=int(min(_VMEM_LIMIT_CAP,
                                     max(32 * 2**20, 1.5 * _est_b(thw))))),
    )(patches, wmk, bias)
    return out_flat.reshape(N, Cout, H_out, W_out)


def _reference(x_nchw, weight_oihw, gamma, beta, running_mean, running_var, *,
               stride, pad, dilation, bn_eps):
    y = jax.lax.conv_general_dilated(
        x_nchw, weight_oihw,
        window_strides=(stride, stride),
        padding=[(pad, pad), (pad, pad)],
        rhs_dilation=(dilation, dilation),
        dimension_numbers=("NCHW", "OIHW", "NCHW"))
    scale = gamma / jnp.sqrt(running_var + bn_eps)
    bias = beta - running_mean * scale
    return jnp.maximum(y * scale[None, :, None, None] + bias[None, :, None, None], 0.0)


if __name__ == "__main__":
    # ConvBnRelu(in_planes=4, out_planes=8, ksize=3, stride=1, pad=1,
    #            has_bn=True, has_relu=True, has_bias=False)
    N, Cin, H, W = 2, 4, 16, 16
    Cout, Ksz = 8, 3
    bn_eps = 1e-5

    key = jax.random.PRNGKey(0)
    kx, kwt, kg, kb, km, kv = jax.random.split(key, 6)
    x = jax.random.normal(kx, (N, Cin, H, W), dtype=jnp.float32)
    weight = jax.random.normal(kwt, (Cout, Cin, Ksz, Ksz), dtype=jnp.float32) * 0.1
    gamma = 1.0 + 0.1 * jax.random.normal(kg, (Cout,), dtype=jnp.float32)
    beta = 0.1 * jax.random.normal(kb, (Cout,), dtype=jnp.float32)
    running_mean = 0.1 * jax.random.normal(km, (Cout,), dtype=jnp.float32)
    running_var = jnp.abs(1.0 + 0.1 * jax.random.normal(kv, (Cout,), dtype=jnp.float32))

    # 1) full-f32 compute path, stride=1 / pad=1 / dilation=1 (tight tolerance)
    out = jax.block_until_ready(
        conv_bn_relu(x, weight, gamma, beta, running_mean, running_var,
                     stride=1, pad=1, bn_eps=bn_eps, compute_dtype=jnp.float32))
    ref = _reference(x, weight, gamma, beta, running_mean, running_var,
                     stride=1, pad=1, dilation=1, bn_eps=bn_eps)
    assert out.shape == (N, Cout, H, W)
    assert jnp.allclose(out, ref, atol=1e-4, rtol=1e-4)

    # 2) default bf16 compute path (MXU-native inputs, f32 accumulate)
    out_bf = jax.block_until_ready(
        conv_bn_relu(x, weight, gamma, beta, running_mean, running_var,
                     stride=1, pad=1, bn_eps=bn_eps))
    assert jnp.allclose(out_bf, ref, atol=5e-2, rtol=5e-2)

    # 3) dilation=2 path in f32 (reference now passes rhs_dilation)
    out_d2 = jax.block_until_ready(
        conv_bn_relu(x, weight, gamma, beta, running_mean, running_var,
                     stride=1, pad=2, dilation=2, bn_eps=bn_eps,
                     compute_dtype=jnp.float32))
    ref_d2 = _reference(x, weight, gamma, beta, running_mean, running_var,
                        stride=1, pad=2, dilation=2, bn_eps=bn_eps)
    assert out_d2.shape == ref_d2.shape
    assert jnp.allclose(out_d2, ref_d2, atol=1e-4, rtol=1e-4)

    print("KERNEL_OK")
</pallas_src>

<mosaic_0001>
module attributes {stable_mosaic.version = 11 : i64} {
  func.func @_shift_panel_kernel(%arg0: i32, %arg1: i32, %arg2: memref<1x4x326xf32, #tpu.memory_space<vmem>>, %arg3: memref<8x40xf32, #tpu.memory_space<vmem>>, %arg4: memref<8x1xf32, #tpu.memory_space<vmem>>, %arg5: memref<1x8x288xf32, #tpu.memory_space<vmem>>) attributes {dimension_semantics = [#tpu.dimension_semantics<parallel>, #tpu.dimension_semantics<parallel>], iteration_bounds = array<i64: 2, 1>, scalar_prefetch = 0 : i64, scratch_operands = 0 : i64, tpu.core_type = #tpu.core_type<tc>, window_params = [{transform_indices = @transform_0, window_bounds = array<i64: 1, 4, 326>}, {transform_indices = @transform_1, window_bounds = array<i64: 8, 40>}, {transform_indices = @transform_2, window_bounds = array<i64: 8, 1>}, {transform_indices = @transform_3, window_bounds = array<i64: 1, 8, 288>}]} {
    %c0 = arith.constant 0 : index
    %c0_0 = arith.constant 0 : index
    %c0_1 = arith.constant 0 : index
    %0 = vector.load %arg2[%c0, %c0_0, %c0_1] : memref<1x4x326xf32, #tpu.memory_space<vmem>>, vector<1x4x288xf32>
    %1 = vector.shape_cast %0 : vector<1x4x288xf32> to vector<4x288xf32>
    %c0_2 = arith.constant 0 : index
    %c0_3 = arith.constant 0 : index
    %c1 = arith.constant 1 : index
    %2 = vector.load %arg2[%c0_2, %c0_3, %c1] : memref<1x4x326xf32, #tpu.memory_space<vmem>>, vector<1x4x288xf32>
    %3 = vector.shape_cast %2 : vector<1x4x288xf32> to vector<4x288xf32>
    %c0_4 = arith.constant 0 : index
    %c0_5 = arith.constant 0 : index
    %c2 = arith.constant 2 : index
    %4 = vector.load %arg2[%c0_4, %c0_5, %c2] : memref<1x4x326xf32, #tpu.memory_space<vmem>>, vector<1x4x288xf32>
    %5 = vector.shape_cast %4 : vector<1x4x288xf32> to vector<4x288xf32>
    %c0_6 = arith.constant 0 : index
    %c0_7 = arith.constant 0 : index
    %c18 = arith.constant 18 : index
    %6 = vector.load %arg2[%c0_6, %c0_7, %c18] : memref<1x4x326xf32, #tpu.memory_space<vmem>>, vector<1x4x288xf32>
    %7 = vector.shape_cast %6 : vector<1x4x288xf32> to vector<4x288xf32>
    %c0_8 = arith.constant 0 : index
    %c0_9 = arith.constant 0 : index
    %c19 = arith.constant 19 : index
    %8 = vector.load %arg2[%c0_8, %c0_9, %c19] : memref<1x4x326xf32, #tpu.memory_space<vmem>>, vector<1x4x288xf32>
    %9 = vector.shape_cast %8 : vector<1x4x288xf32> to vector<4x288xf32>
    %c0_10 = arith.constant 0 : index
    %c0_11 = arith.constant 0 : index
    %c20 = arith.constant 20 : index
    %10 = vector.load %arg2[%c0_10, %c0_11, %c20] : memref<1x4x326xf32, #tpu.memory_space<vmem>>, vector<1x4x288xf32>
    %11 = vector.shape_cast %10 : vector<1x4x288xf32> to vector<4x288xf32>
    %c0_12 = arith.constant 0 : index
    %c0_13 = arith.constant 0 : index
    %c36 = arith.constant 36 : index
    %12 = vector.load %arg2[%c0_12, %c0_13, %c36] : memref<1x4x326xf32, #tpu.memory_space<vmem>>, vector<1x4x288xf32>
    %13 = vector.shape_cast %12 : vector<1x4x288xf32> to vector<4x288xf32>
    %c0_14 = arith.constant 0 : index
    %c0_15 = arith.constant 0 : index
    %c37 = arith.constant 37 : index
    %14 = vector.load %arg2[%c0_14, %c0_15, %c37] : memref<1x4x326xf32, #tpu.memory_space<vmem>>, vector<1x4x288xf32>
    %15 = vector.shape_cast %14 : vector<1x4x288xf32> to vector<4x288xf32>
    %c0_16 = arith.constant 0 : index
    %c0_17 = arith.constant 0 : index
    %c38 = arith.constant 38 : index
    %16 = vector.load %arg2[%c0_16, %c0_17, %c38] : memref<1x4x326xf32, #tpu.memory_space<vmem>>, vector<1x4x288xf32>
    %17 = vector.shape_cast %16 : vector<1x4x288xf32> to vector<4x288xf32>
    %cst = arith.constant 0.000000e+00 : f32
    %18 = vector.broadcast %cst : f32 to vector<4x288xf32>
    %19 = tpu.concatenate %1, %3, %5, %7, %9, %11, %13, %15, %17, %18 in 0 : vector<4x288xf32>, vector<4x288xf32>, vector<4x288xf32>, vector<4x288xf32>, vector<4x288xf32>, vector<4x288xf32>, vector<4x288xf32>, vector<4x288xf32>, vector<4x288xf32>, vector<4x288xf32> -> vector<40x288xf32>
    %c0_18 = arith.constant 0 : index
    %c0_19 = arith.constant 0 : index
    %20 = vector.load %arg3[%c0_18, %c0_19] : memref<8x40xf32, #tpu.memory_space<vmem>>, vector<8x40xf32>
    %cst_20 = arith.constant dense<0.000000e+00> : vector<8x288xf32>
    %21 = tpu.matmul %20, %19, %cst_20 {dimension_numbers = #tpu.dot_dimension_numbers<[1], [0], [0], [1], [0, 0, 1, 1], [], []>} : vector<8x40xf32>, vector<40x288xf32>, vector<8x288xf32> -> vector<8x288xf32>
    %c0_21 = arith.constant 0 : index
    %c0_22 = arith.constant 0 : index
    %22 = vector.load %arg4[%c0_21, %c0_22] : memref<8x1xf32, #tpu.memory_space<vmem>>, vector<8x1xf32>
    %23 = vector.broadcast %22 : vector<8x1xf32> to vector<8x288xf32>
    %24 = arith.addf %21, %23 : vector<8x288xf32>
    %cst_23 = arith.constant 0.000000e+00 : f32
    %25 = vector.broadcast %cst_23 : f32 to vector<8x288xf32>
    %26 = arith.maximumf %24, %25 : vector<8x288xf32>
    %c0_24 = arith.constant 0 : index
    %c0_25 = arith.constant 0 : index
    %c0_26 = arith.constant 0 : index
    %27 = vector.load %arg5[%c0_24, %c0_25, %c0_26] : memref<1x8x288xf32, #tpu.memory_space<vmem>>, vector<1x8x288xf32>
    %28 = vector.shape_cast %27 : vector<1x8x288xf32> to vector<8x288xf32>
    %29 = vector.shape_cast %26 : vector<8x288xf32> to vector<1x8x288xf32>
    tpu.vector_store %arg5[%c0_24, %c0_25, %c0_26], %29 {strides = array<i32>} : memref<1x8x288xf32, #tpu.memory_space<vmem>>, vector<1x8x288xf32>,
    return
  }
  func.func @transform_0(%arg0: i32, %arg1: i32) -> (i32, i32, i32) {
    %c0_i32 = arith.constant 0 : i32
    %c0_i32_0 = arith.constant 0 : i32
    %c0_i32_1 = arith.constant 0 : i32
    return %arg0, %c0_i32, %c0_i32_0 : i32, i32, i32
  }
  func.func @transform_1(%arg0: i32, %arg1: i32) -> (i32, i32) {
    %c0_i32 = arith.constant 0 : i32
    %c0_i32_0 = arith.constant 0 : i32
    return %arg1, %c0_i32 : i32, i32
  }
  func.func @transform_2(%arg0: i32, %arg1: i32) -> (i32, i32) {
    %c0_i32 = arith.constant 0 : i32
    %c0_i32_0 = arith.constant 0 : i32
    return %arg1, %c0_i32 : i32, i32
  }
  func.func @transform_3(%arg0: i32, %arg1: i32) -> (i32, i32, i32) {
    %c0_i32 = arith.constant 0 : i32
    %c0_i32_0 = arith.constant 0 : i32
    return %arg0, %arg1, %c0_i32 : i32, i32, i32
  }
}

</mosaic_0001>

<bundles_post_ra>
// kernel: tpu_custom_call.1
= control target key start
LH: loop header
LB: loop body
LE: loop exit
PB: predicated region body
PF: predicated region fallthrough
CT: control target
= control target key end

     0   :  { %8 = vsyncpa [#allocation3], 0  ;;  %s1175_s0 = inlined_call_operand.hbm [shape: f32[2,4,326], index: 0, kind: input, shape index: {}]   ;;  %s1176_s1 = inlined_call_operand.vmem [shape: f32[8,40], index: 1, kind: input, shape index: {}]   ;;  %s1177_s2 = inlined_call_operand.vmem [shape: f32[8,1], index: 2, kind: input, shape index: {}]   ;;  %s1178_s3 = inlined_call_operand.hbm [shape: f32[2,8,288], index: 3, kind: output, shape index: {}]  }
   0x1   :  { %10 = vsyncpa [#allocation3 + $0x1], 0 }
   0x2   :  { %11 = vsyncpa [#allocation4], 0 }
   0x3   :  { %13 = vsyncpa [#allocation4 + $0x1], 0  ;;  %s958_s12 = smov 0   ;;  %s960_s13 = smov 0  }
   0x4   :  { %s962_s14 = smov 0   ;;  %s964_s15 = smov 0  }
   0x5   :  { %s966_s16 = smov 0   ;;  %s968_s17 = smov 0  }
   0x6 LB: > { %s642_s18 = sadd.s32 4294967295, %s922_s17   ;;  %s643_s19 = sadd.s32 4294967294, %s922_s17   ;;  %s922_s17 = sphi %s968_s17, %s19_s17   ;;  %s918_s16 = sphi %s966_s16, %s1193_s16   ;;  %s914_s15 = sphi %s964_s15, %s1192_s15   ;;  %s910_s14 = sphi %s962_s14, %s1191_s14   ;;  %s906_s13 = sphi %s960_s13, %s1190_s13   ;;  %s902_s12 = sphi %s958_s12, %s1189_s12  }
   0x7   : > { %s31_s20 = sadd.s32 1, %s918_s16  ;;  %s38_s21 = sadd.s32 1, %s910_s14 }
   0x8   : > { %p33_p0 = scmp.ge.s32.totalorder %s31_s20, 2  ;;  %p45_p1 = scmp.ne.s32.totalorder %s910_s14, %s906_s13 }
   0x9   : > { %p46_p2 = scmp.eq.s32.totalorder %s922_s17, 0  ;;  %p51_p3 = scmp.ne.s32.totalorder %s906_s13, %s902_s12 }
   0xa   : > { %s1195_s20 = smov (%p33_p0, %s31_s20), 0  ;;  %p52_p5 = scmp.eq.s32.totalorder %s642_s18, 0 }
   0xb   : > { %p999_p4 = por %p46_p2, %p45_p1  ;;  %s35_s23 = ssub.s32 %s918_s16, %s1195_s20 }
   0xc   : > { %p129_p6 = scmp.eq.s32.totalorder %s642_s18, 1  ;;  %p36_p7 = scmp.eq.s32.totalorder %s35_s23, 0 }
   0xd   : > { %p1005_p8 = por %p52_p5, %p51_p3  ;;  %p135_p10 = scmp.eq.s32.totalorder %s643_s19, 1 }
   0xe   : > { %p1009_p9 = por %p129_p6, %p45_p1  ;;  %p708_p13 = scmp.lt.s32.totalorder %s922_s17, 2 }
   0xf   : > { %s1014_s26 = scalar_select %p36_p7, %s910_s14, %s38_s21  }
  0x10   : > { %s1182_s25 = scalar_select %p1009_p9, 1, 0 }
  0x11   : > { %p1016_p11 = por %p135_p10, %p51_p3  ;;  %s169_s28 = sand.u32 1, %s910_s14  }
  0x12   : > { %s691_s29 = smul.u32 12, %s169_s28  ;;  %p1026_p0 = pnand %p708_p13, %p999_p4 }
  0x13   : > { %s1183_s27 = scalar_select %p1016_p11, 1, 0 }
  0x14   : > { %s692_s30 = smul.u32 192, %s918_s16  ;;  %s173_s8 = scalar_lea.vmem [#allocation2], %s691_s29 }
  0x15   : > { %s181_s9 = sshll.u32 %s173_s8, 4  ;;  %s170_s10 = scalar_lea.sflag [#allocation3], %s169_s28  ;;  %s1036_s9 = int_to_ptr.vmem [resolvable:$true] %s181_s9 }
  0x16   : > { %s1034_s7 = scalar_lea.hbm %s1175_s0, %s692_s30  ;;  %p812_p3 = pneg %p1026_p0 }
  0x17   : > { %s810_s11 = scalar_lea.hbm %s1034_s7, 192  ;;  %s815_s21 = scalar_lea.hbm %s1175_s0, 384 }
  0x18   : > { %p811_p2 = scmp.ne.s32.totalorder %s1034_s7, %s810_s11  ;;  %p816_p6 = scmp.lt.u32.totalorder %s1034_s7, %s1175_s0 }
  0x19   : > { %p817_p7 = scmp.lt.u32.totalorder %s815_s21, %s810_s11  ;;  %p819_p13 = scmp.lt.u32.totalorder %s810_s11, %s1034_s7 }
  0x1a   : > { %p813_p4 = pnand %p812_p3, %p811_p2 }
  0x1b   : > { %p818_p10 = por %p817_p7, %p816_p6 }
  0x1c   : > { %p814_p5 = pneg %p813_p4 }
  0x1d   : > { %p820_p12 = por %p819_p13, %p818_p10 }
  0x1f   : > { %p821_p1 = pnand %p820_p12, %p814_p5 }
  0x21   : > { %824 = shalt.err (!%p821_p1)
}
  0x22   : > { %s825_s28 = scalar_lea.vmem %s1036_s9, 192  ;;  %s924_s29 = smov [#allocation2]  }
  0x23   : > { %p826_p2 = scmp.ne.s32.totalorder %s1036_s9, %s825_s28  ;;  %s830_s30 = sshll.u32 %s924_s29, 4  ;;  %s831_s30 = int_to_ptr.vmem [resolvable:$false] %s830_s30 }
  0x24   : > { %s832_s5 = scalar_lea.vmem %s831_s30, 384  ;;  %p833_p9 = scmp.lt.s32.totalorder %s1036_s9, %s831_s30 }
  0x25   : > { %p828_p4 = pnand %p826_p2, %p812_p3  ;;  %p834_p6 = scmp.lt.s32.totalorder %s832_s5, %s825_s28 }
  0x27   : > { %p829_p11 = pneg %p828_p4  ;;  %p835_p7 = por %p834_p6, %p833_p9 }
  0x29   : > { %p836_p10 = pnand %p835_p7, %p829_p11 }
  0x2b   : > { %839 = shalt.err (!%p836_p10)
}
  0x2c   : > { %703 = dma.hbm_to_vmem [thread:$0]  (!%p1026_p0), %s1034_s7, 192, %s1036_s9, %s170_s10  }
  0x2d   : > { %p186_p12 = scmp.lt.s32.totalorder %s922_s17, 3  ;;  %p1185_p1 = scmp.ge.s32.totalorder %s922_s17, 1 }
  0x2f   : > { %p187_p3 = pnand %p1185_p1, %p186_p12 }
  0x30   : > { %s1067_s6 = sand.u32 (!%p187_p3), 1, %s906_s13  }
  0x31   : > { %190 = sbr.rel (%p187_p3) target bundleno = 441 (0x1b9), region = 32  ;;  %s193_s11 = scalar_lea.sflag (!%p187_p3), [#allocation3], %s1067_s6 }
  0x32   : > { %s693_s8 = smul.u32 (!%p187_p3), 12, %s1067_s6 }
  0x34   : > { %s196_s18 = scalar_lea.vmem (!%p187_p3), [#allocation2], %s693_s8 }
  0x38   : > { %893 = dma.done.wait (%p1005_p8), %s193_s11, 192  }
  0x39   : > { %895 = vsyncadd (%p1005_p8), %s193_s11, 4294967104  ;;  %v1075_v0 = vld [vmem:[%s196_s18] sm:$0xff]  ;;  %v236_v1 = vld [vmem:[%s196_s18 + $0x8] sm:$0xf]  ;;  %v925_v2 = vmov 0.0|0.0   ;;  %s926_s4 = smov 126  }
  0x3a   : > { %685 = vmatprep.subr.bf16.mxu1 %v925_v2  ;;  %255 = vrot.lane.b32.xlu0 %v1075_v0, %s926_s4  ;;  %v242_v3 = vcombine.low %v236_v1, %v236_v1  ;;  %v239_v4 = vcombine.high %v1075_v0, %v1075_v0  ;;  %s927_s7 = smov 110   ;;  %s928_s9 = smov 127   ;;  %v241_v6 = vcombine.low %v1075_v0, %v1075_v0  ;;  %v933_v8 = vmov 0.0   ;;  %v356_v10 = vld [vmem:[%s1177_s2] sm:$0xff] }
  0x3b   : > { %s929_s24 = smov 109   ;;  %s930_s10 = smov 108   ;;  %430 = vmatprep.mubr.f32.mxu0 %v933_v8  ;;  %vm934_vm0 = vmmov 0   ;;  %v935_v9 = vmov 0   ;;  %vm249_vm1 = vcmask 1039360   ;;  %vm339_vm2 = vcmask 1043456  }
  0x3c   : > { %v780_v5 = vpack.i.bf16 %v242_v3, %v1075_v0  ;;  %v775_v7 = vpack.i.bf16 %v236_v1, %v239_v4  ;;  %s931_s19 = smov 92   ;;  %s932_s21 = smov 91   ;;  %674 = vmatprep.mubr.msk.f32.mxu1 %vm934_vm0, %v933_v8  ;;  %805 = vset.pattern.permute.xlu1 %v935_v9  ;;  %vm273_vm3 = vcmask 900096   ;;  %vm261_vm4 = vcmask 1031168  }
  0x3d   : > { %806 = vset.pattern.permute.xlu0 %v935_v9  ;;  %s936_s22 = smov 90   ;;  %vm285_vm5 = vcmask 891904   ;;  %vm297_vm6 = vcmask 883712   ;;  %vm309_vm7 = vcmask 752640   ;;  %vm321_vm8 = vcmask 744448   ;;  %v355_v9 = vld [vmem:[%s1176_s1] sm:$0xff] }
  0x3e   : > { %781 = vrot.lane.b32.xlu1 %v780_v5, %s927_s7  ;;  %771 = vrot.lane.b32.xlu0 %v780_v5, %s928_s9  ;;  %vm333_vm9 = vcmask 736256   ;;  %vm362_vm10 = vcmask 326656   ;;  %s694_s5 = smul.u32 24, %s1067_s6  ;;  %vm512_vm11 = vcmask 261120   ;;  %p1186_p9 = scmp.ne.s32.totalorder %s1182_s25, 0 }
  0x3f   : > { %s695_s8 = smul.u32 384, %s914_s15  ;;  %s515_s15 = scalar_lea.sflag [#allocation4], %s1067_s6 }
  0x40   : > { %s226_s11 = scalar_lea.vmem [#allocation5], %s694_s5 }
  0x41   : > { %s531_s18 = sshll.u32 %s226_s11, 4  ;;  %s1128_s18 = int_to_ptr.vmem [resolvable:$true] %s531_s18 }
  0x42   : > { %243 = vrot.lane.b32.xlu1 %v241_v6, %s928_s9  ;;  %776 = vrot.lane.b32.xlu0 %v775_v7, %s926_s4  ;;  %s1126_s9 = scalar_lea.hbm %s1178_s3, %s695_s8 }
  0x46   : > { %267 = vrot.lane.b32.xlu1 %v241_v6, %s927_s7  ;;  %786 = vrot.lane.b32.xlu0 %v775_v7, %s929_s24 }
  0x4a   : > { %791 = vrot.lane.b32.xlu1 %v780_v5, %s930_s10  ;;  %796 = vrot.lane.b32.xlu0 %v775_v7, %s931_s19 }
  0x4e   : > { %801 = vrot.lane.b32.xlu1 %v780_v5, %s932_s21  ;;  %279 = vrot.lane.b32.xlu0 %v1075_v0, %s929_s24  ;;  %s840_s24 = scalar_lea.vmem %s1128_s18, 384 }
  0x4f   : > { %p841_p8 = scmp.ne.s32.totalorder %s1128_s18, %s840_s24 }
  0x51   : > { %p842_p11 = pnand %p841_p8, %p1186_p9 }
  0x52   : > { %291 = vrot.lane.b32.xlu1 %v241_v6, %s930_s10  ;;  %303 = vrot.lane.b32.xlu0 %v1075_v0, %s931_s19  ;;  %s937_s10 = smov [#allocation5]  }
  0x53   : > { %p843_p0 = pneg %p842_p11  ;;  %s844_s19 = sshll.u32 %s937_s10, 4  ;;  %s845_s19 = int_to_ptr.vmem [resolvable:$false] %s844_s19 }
  0x54   : > { %p847_p5 = scmp.lt.s32.totalorder %s1128_s18, %s845_s19 }
  0x56   : > { %315 = vrot.lane.b32.xlu1 %v241_v6, %s932_s21  ;;  %329 = vrot.lane.b32.xlu0 %v239_v4, %s936_s22  ;;  %s846_s21 = scalar_lea.vmem %s845_s19, 768 }
  0x57   : > { %p848_p13 = scmp.lt.s32.totalorder %s846_s21, %s840_s24 }
  0x59   : > { %p849_p2 = por %p848_p13, %p847_p5 }
  0x5a   : > { %331 = vrot.lane.b32.xlu1 %v236_v1, %s936_s22  ;;  %327 = vrot.lane.b32.xlu0 %v1075_v0, %s936_s22 }
  0x5b   : > { %p850_p4 = pnand %p849_p2, %p843_p0 }
  0x5e   : > { %359 = vperm.xlu1 %805, %v356_v10  }
  0xac   : > { %v256_v11 = vpop.permute.xlu0 %255 }
  0xb0   : > { %v782_v12 = vpop.permute.xlu1 %781  ;;  %v772_v13 = vpop.permute.xlu0 %771 }
  0xb1   : > { %v774_v14 = vunpack.i.h.bf16 %v772_v13  ;;  %v773_v15 = vunpack.i.l.bf16 %v772_v13  ;;  %v784_v16 = vunpack.i.h.bf16 %v782_v12  ;;  %v783_v17 = vunpack.i.l.bf16 %v782_v12 }
  0xb3   : > { %v251_v18 = vsel %vm249_vm1, %v773_v15, %v774_v14  ;;  %v342_v23 = vsel %vm339_vm2, %v236_v1, %v774_v14  ;;  %v275_v28 = vsel %vm273_vm3, %v783_v17, %v784_v16 }
  0xb4   : > { %v244_v19 = vpop.permute.xlu1 %243  ;;  %v777_v20 = vpop.permute.xlu0 %776  ;;  %v341_v24 = vsel %vm339_vm2, %v239_v4, %v251_v18 }
  0xb5   : > { %v779_v21 = vunpack.i.h.bf16 %v777_v20  ;;  %v778_v22 = vunpack.i.l.bf16 %v777_v20  ;;  %v250_v25 = vsel %vm249_vm1, %v244_v19, %v773_v15 }
  0xb6   : > { %v340_v36 = vsel %vm339_vm2, %v1075_v0, %v250_v25 }
  0xb7   : > { %v345_v26 = vsel %vm339_vm2, %v779_v21, %v784_v16  ;;  %v263_v27 = vsel %vm261_vm4, %v778_v22, %v779_v21  ;;  %v262_v35 = vsel %vm261_vm4, %v256_v11, %v778_v22 }
  0xb8   : > { %v268_v29 = vpop.permute.xlu1 %267  ;;  %v787_v30 = vpop.permute.xlu0 %786  ;;  %v686_v31 = vpack.c.bf16 %v345_v26, %v342_v23  ;;  %v344_v32 = vsel %vm339_vm2, %v263_v27, %v275_v28 }
  0xb9   : > { %v274_v33 = vsel %vm273_vm3, %v268_v29, %v783_v17  ;;  %v677_v34 = vpack.c.bf16 %v344_v32, %v341_v24  ;;  %v789_v39 = vunpack.i.h.bf16 %v787_v30  ;;  %v788_v40 = vunpack.i.l.bf16 %v787_v30 }
  0xba   : > { %687 = vmatpush3.bf16.msra.mxu1 %v686_v31  ;;  %v343_v37 = vsel %vm339_vm2, %v262_v35, %v274_v33 }
  0xbb   : > { %678 = vmatprep.subr.bf16.mxu0 %v677_v34  ;;  %v679_v38 = vpack.c.bf16 %v343_v37, %v340_v36  ;;  %688 = vmatprep.subr.bf16.mxu1 %v925_v2  ;;  %v287_v49 = vsel %vm285_vm5, %v788_v40, %v789_v39 }
  0xbc   : > { %v792_v41 = vpop.permute.xlu1 %791  ;;  %v797_v42 = vpop.permute.xlu0 %796 }
  0xbd   : > { %v794_v43 = vunpack.i.h.bf16 %v792_v41  ;;  %v793_v44 = vunpack.i.l.bf16 %v792_v41  ;;  %v799_v45 = vunpack.i.h.bf16 %v797_v42  ;;  %v798_v46 = vunpack.i.l.bf16 %v797_v42  ;;  %680 = vmatpush1.bf16.msra.mxu0 %v679_v38 }
  0xbf   : > { %v299_v52 = vsel %vm297_vm6, %v793_v44, %v794_v43  ;;  %v311_v53 = vsel %vm309_vm7, %v798_v46, %v799_v45  ;;  %v348_v55 = vsel %vm339_vm2, %v789_v39, %v794_v43 }
  0xc0   : > { %v802_v47 = vpop.permute.xlu1 %801  ;;  %v280_v48 = vpop.permute.xlu0 %279  ;;  %v347_v60 = vsel %vm339_vm2, %v287_v49, %v299_v52 }
  0xc1   : > { %v804_v50 = vunpack.i.h.bf16 %v802_v47  ;;  %v803_v51 = vunpack.i.l.bf16 %v802_v47  ;;  %v286_v2 = vsel %vm285_vm5, %v280_v48, %v788_v40 }
  0xc3   : > { %v323_v54 = vsel %vm321_vm8, %v803_v51, %v804_v50  ;;  %v351_v56 = vsel %vm339_vm2, %v799_v45, %v804_v50 }
  0xc4   : > { %v292_v57 = vpop.permute.xlu1 %291  ;;  %v304_v58 = vpop.permute.xlu0 %303  ;;  %v689_v59 = vpack.c.bf16 %v351_v56, %v348_v55  ;;  %v350_v61 = vsel %vm339_vm2, %v311_v53, %v323_v54 }
  0xc5   : > { %v681_v62 = vpack.c.bf16 %v350_v61, %v347_v60  ;;  %v298_v63 = vsel %vm297_vm6, %v292_v57, %v793_v44  ;;  %v310_v3 = vsel %vm309_vm7, %v304_v58, %v798_v46 }
  0xc6   : > { %690 = vmatpush3.bf16.msra.mxu1 %v689_v59  ;;  %v346_v5 = vsel %vm339_vm2, %v286_v2, %v298_v63 }
  0xc7   : > { %682 = vmatprep.subr.bf16.mxu0 %v681_v62  ;;  %672 = vmatprep.subr.mxu1 %v933_v8 }
  0xc8   : > { %v316_v0 = vpop.permute.xlu1 %315  ;;  %v330_v1 = vpop.permute.xlu0 %329 }
  0xc9   : > { %v322_v4 = vsel %vm321_vm8, %v316_v0, %v803_v51 }
  0xca   : > { %v349_v6 = vsel %vm339_vm2, %v310_v3, %v322_v4 }
  0xcb   : > { %v683_v7 = vpack.c.bf16 %v349_v6, %v346_v5 }
  0xcc   : > { %v332_v8 = vpop.permute.xlu1 %331  ;;  %v328_v11 = vpop.permute.xlu0 %327 }
  0xcd   : > { %v335_v10 = vsel %vm333_vm9, %v330_v1, %v332_v8  ;;  %684 = vmatpush1.bf16.msra.mxu0 %v683_v7  ;;  %673 = vmatpush3.msk.msra.mxu1 %vm339_vm2, %v332_v8  ;;  %v334_v12 = vsel %vm333_vm9, %v328_v11, %v330_v1 }
  0xce   : > { %650 = vmatprep.subr.msk.mxu0 %vm339_vm2, %v335_v10  ;;  %675 = vmatmul.mubr.msk.f32.vlgmr.msra.gmra.mrb[0].mxu1 %vm362_vm10, %v355_v9 }
  0xd1   : > { %651 = vmatpush1.msk.msra.mxu0 %vm339_vm2, %v334_v12 }
  0xd2   : > { %652 = vmatmul.mubr.msk.f32.vlgmr.msra.gmra.mrb[0].mxu0 %vm362_vm10, %v355_v9 }
  0xdd   : > { %v360_v13 = vpop.permute.xlu1 %359 }
 0x1a1   : > { %v503_v14 = vpop.f32.mrb[0].mxu1 }
 0x1a2   : > { %v504_v15 = vadd.f32 %v503_v14, %v360_v13  ;;  %v676_v16 = vpop.f32.mrb[1].mxu1 }
 0x1a4   : > { %v509_v17 = vmax.f32 %v504_v15, 0.0 }
 0x1a5   : > { %v432_v18 = vpop.f32.mrb[0].mxu0 }
 0x1a6   : > { %v433_v19 = vadd.f32 %v432_v18, %v360_v13  ;;  %513 = vst.msk [vmem:[%s226_s11 + $0x10] sm:$0xff] %vm512_vm11, %v509_v17  ;;  %v434_v20 = vpop.f32.mrb[1].mxu0 }
 0x1a7   : > { %v435_v21 = vadd.f32 %v434_v20, %v360_v13 }
 0x1a8   : > { %v507_v22 = vmax.f32 %v433_v19, 0.0 }
 0x1a9   : > { %v508_v23 = vmax.f32 %v435_v21, 0.0 }
 0x1aa   : > { %510 = vst [vmem:[%s226_s11] sm:$0xff] %v507_v22 }
 0x1ab   : > { %511 = vst [vmem:[%s226_s11 + $0x8] sm:$0xff] %v508_v23 }
 0x1ac   : > { %853 = shalt.err (!%p850_p4)
}
 0x1ad   : > { %s854_s6 = scalar_lea.hbm %s1126_s9, 384  ;;  %s858_s28 = scalar_lea.hbm %s1178_s3, 768 }
 0x1ae   : > { %p855_p6 = scmp.ne.s32.totalorder %s1126_s9, %s854_s6  ;;  %p859_p12 = scmp.lt.u32.totalorder %s1126_s9, %s1178_s3 }
 0x1af   : > { %p860_p1 = scmp.lt.u32.totalorder %s858_s28, %s854_s6  ;;  %p862_p8 = scmp.lt.u32.totalorder %s854_s6, %s1126_s9 }
 0x1b0   : > { %p856_p7 = pnand %p855_p6, %p1186_p9 }
 0x1b1   : > { %p861_p3 = por %p860_p1, %p859_p12 }
 0x1b2   : > { %p857_p10 = pneg %p856_p7 }
 0x1b3   : > { %p863_p11 = por %p862_p8, %p861_p3 }
 0x1b5   : > { %p864_p0 = pnand %p863_p11, %p857_p10 }
 0x1b7   : > { %867 = shalt.err (!%p864_p0)
}
 0x1b8   : > { %698 = dma.vmem_to_hbm [thread:$0]  (%p1186_p9), %s1128_s18, 384, %s1126_s9, %s515_s15  }
 0x1b9 PF: > { %s543_s5 = sand.u32 1, %s902_s12   ;;  %p1187_p5 = scmp.ne.s32.totalorder %s1183_s27, 0 }
 0x1ba   : > { %p1188_p13 = scmp.ge.s32.totalorder %s922_s17, 2  ;;  %s544_s8 = scalar_lea.sflag [#allocation4], %s543_s5 }
 0x1bc   : > { %p705_p2 = pnand %p1188_p13, %p1187_p5 }
 0x1be   : > { %897 = dma.done.wait (!%p705_p2), %s544_s8, 384  }
 0x1bf   : > { %899 = vsyncadd (!%p705_p2), %s544_s8, 4294966912  ;;  %s19_s17 = sadd.s32 1, %s922_s17   ;;  %s1189_s12 = smov %s906_s13 }
 0x1c0   : > { %p16_p4 = scmp.ge.s32.totalorder %s19_s17, 4   ;;  %s1190_s13 = smov %s910_s14 }
 0x1c1   : > { %s1191_s14 = smov %s1014_s26  ;;  %s1192_s15 = smov %s918_s16 }
 0x1c2   : > { %s1193_s16 = smov %s1195_s20  ;;  %18 = sbr.rel (!%p16_p4) target bundleno = 6 (0x6), region = 83 }
 0x1c9   :  { %549 = vsyncpa [#allocation3], 1 }
 0x1ca   :  { %551 = vsyncpa [#allocation3 + $0x1], 1 }
 0x1cb   :  { %552 = vsyncpa [#allocation4], 1 }
 0x1cc   :  { %554 = vsyncpa [#allocation4 + $0x1], 1 }

</bundles_post_ra>
